<compile_context>
chip_gen: v7x
topology: tpu7x:2x2x1
jax: 0.10.0
libtpu: 0.0.40
codegen_flags: <defaults>
</compile_context>

<pallas_src>
import functools

import numpy as np
import jax
import jax.numpy as jnp
from jax.experimental import pallas as pl
from jax.experimental.pallas import tpu as pltpu

_F32_MAX = np.float32(np.finfo(np.float32).max)
_F32_MIN = np.float32(np.finfo(np.float32).min)


def _nan_to_num(x, posinf, neginf):
    """Mirror torch.nan_to_num with explicit posinf/neginf replacements."""
    x = jnp.where(jnp.isnan(x), jnp.float32(0.0), x)
    x = jnp.where(x == jnp.inf, posinf, x)
    x = jnp.where(x == -jnp.inf, neginf, x)
    return x


def _study_loss_kernel(inp_ref, tgt_ref, out_ref, *, eps, weighted):
    # inp_ref: (3, 25, bs) float32 logits, class-major, batch on lanes.
    # tgt_ref: (25, bs) float32 labels (0/1/2, -1 masked, -100 missed).
    f32 = jnp.float32
    x0 = inp_ref[0]          # (25, bs)
    x1 = inp_ref[1]
    x2 = inp_ref[2]
    t = tgt_ref[...]         # (25, bs)
    bs = t.shape[1]

    # ---- unrolled 3-class log-softmax (elementwise only; no XLU lane reduce) ----
    m = jnp.maximum(jnp.maximum(x0, x1), x2)
    z0 = x0 - m
    z1 = x1 - m
    z2 = x2 - m
    e0 = jnp.exp(z0)
    e1 = jnp.exp(z1)
    e2 = jnp.exp(z2)
    s = e0 + e1 + e2
    lse = jnp.log(s)
    lp0 = z0 - lse
    lp1 = z1 - lse
    lp2 = z2 - lse

    # ---- SmoothCrossEntropyLoss via per-class selects ----
    mask = t == -1.0                       # labels to ignore
    t_cl = jnp.maximum(t, 0.0)             # torch.clamp(min=0)
    oh0 = (t_cl == 0.0).astype(f32)
    oh1 = (t_cl == 1.0).astype(f32)
    oh2 = (t_cl == 2.0).astype(f32)
    if eps > 0:
        on = 1.0 - eps
        off = eps / 2.0                    # eps / (n_class - 1), n_class = 3
        oh0 = oh0 * on + (1.0 - oh0) * off
        oh1 = oh1 * on + (1.0 - oh1) * off
        oh2 = oh2 * on + (1.0 - oh2) * off
    loss = -(oh0 * lp0 + oh1 * lp1 + oh2 * lp2)        # (25, bs)
    loss = jnp.where(mask, 0.0, loss)                  # masked_fill

    # ---- per-label weights w = 2 ** targets ----
    if weighted:
        w = jnp.exp2(t)
    else:
        w = jnp.ones_like(t)

    # ---- single-pass masked section reductions (sections on the sublane axis) ----
    row = jax.lax.broadcasted_iota(jnp.int32, t.shape, 0)      # organ index 0..24
    scs_b = row < 5
    nfn_b = (row >= 5) & (row < 15)
    ss_b = row >= 15
    m_scs = scs_b.astype(f32)
    m_nfn = nfn_b.astype(f32)
    m_ss = ss_b.astype(f32)

    lw = loss * w
    missed = (t == -100.0).astype(f32)

    def _section(sec_mask, n_rows):
        raw = jnp.sum(lw * sec_mask) / jnp.sum(w * sec_mask)
        mr = jnp.sum(missed * sec_mask) / f32(n_rows * bs)
        return raw, mr

    raw_scs, mr_scs = _section(m_scs, 5)    # spleen / liver / kidney etc.
    raw_nfn, mr_nfn = _section(m_nfn, 10)
    raw_ss, mr_ss = _section(m_ss, 10)

    # ---- "any injury" head (reuse softmax exponentials; no extra exp pass) ----
    neg_inf = f32(-jnp.inf)
    any_tf = jnp.max(jnp.where(scs_b, t, neg_inf), axis=0, keepdims=True)   # (1, bs)
    p2 = e2 / s                                                             # softmax prob of class 2
    any_pred = jnp.max(jnp.where(scs_b, p2, neg_inf), axis=0, keepdims=True)
    if weighted:
        # 2 ** max(t) == max(2 ** t): reuse w instead of a second exp2.
        any_w = jnp.max(jnp.where(scs_b, w, 0.0), axis=0, keepdims=True)
    else:
        any_w = jnp.ones_like(any_tf)
    any_t = (any_tf == 2.0).astype(f32)
    al = -any_t * jnp.log(any_pred) - (1.0 - any_t) * jnp.log(1.0 - any_pred)
    al = _nan_to_num(al, jnp.float32(0.0), jnp.float32(0.0))    # nan/±inf -> 0
    any_loss = jnp.sum(any_w * al) / jnp.sum(any_w)

    # outputs (SMEM scalar vector):
    #  [0:4]  nan_to_num'd section losses + any_loss  (use_any=True return values)
    #  [4:7]  missed ratios
    #  [7:10] raw section losses (needed for the use_any=False branch)
    out_ref[0] = _nan_to_num(raw_scs, _F32_MAX, _F32_MIN)
    out_ref[1] = _nan_to_num(raw_nfn, _F32_MAX, _F32_MIN)
    out_ref[2] = _nan_to_num(raw_ss, _F32_MAX, _F32_MIN)
    out_ref[3] = _nan_to_num(any_loss, _F32_MAX, _F32_MIN)
    out_ref[4] = mr_scs
    out_ref[5] = mr_nfn
    out_ref[6] = mr_ss
    out_ref[7] = raw_scs
    out_ref[8] = raw_nfn
    out_ref[9] = raw_ss


def study_loss(inputs, targets, eps=0.0, weighted=True, use_any=True):
    """Pallas implementation of StudyLoss.forward.

    inputs:  (bs, 25, 3) float logits
    targets: (bs, 25) float labels (0/1/2, -1 masked, -100 missed)
    """
    assert inputs.ndim == 3 and inputs.shape[1] == 25 and inputs.shape[2] == 3, "Wrong input size"
    assert targets.ndim == 2 and targets.shape[1] == 25, "Wrong target size"
    num_studies = inputs.shape[0]

    # Lane-dense layout: batch on the lane axis, class axis leading (unrolled in-kernel).
    inputs_t = jnp.transpose(inputs.astype(jnp.float32), (2, 1, 0))   # (3, 25, bs)
    targets_t = jnp.transpose(targets.astype(jnp.float32), (1, 0))    # (25, bs)

    kernel = functools.partial(_study_loss_kernel, eps=eps, weighted=weighted)
    out = pl.pallas_call(
        kernel,
        out_shape=jax.ShapeDtypeStruct((10,), jnp.float32),
        in_specs=[
            pl.BlockSpec(memory_space=pltpu.MemorySpace.VMEM),
            pl.BlockSpec(memory_space=pltpu.MemorySpace.VMEM),
        ],
        out_specs=pl.BlockSpec(memory_space=pltpu.MemorySpace.SMEM),
    )(inputs_t, targets_t)

    if not use_any:
        # PyTorch returns the raw (non nan_to_num'd) average in this branch.
        return (out[7] + out[8] + out[9]) / 3.0
    return (out[0], out[1], out[2], out[3], out[4], out[5], out[6], num_studies)


def _ref_study_loss(inputs, targets, eps=0.0, weighted=True, use_any=True):
    """Pure-JAX mirror of the PyTorch StudyLoss forward, for verification."""
    inputs = inputs.astype(jnp.float32)
    targets = targets.astype(jnp.float32)
    bs = inputs.shape[0]

    mask = targets == -1.0
    t_cl = jnp.maximum(targets, 0.0).astype(jnp.int32)
    onehot = jax.nn.one_hot(t_cl, 3, dtype=jnp.float32)
    if eps > 0:
        onehot = onehot * (1.0 - eps) + (1.0 - onehot) * eps / 2.0
    logp = jax.nn.log_softmax(inputs, axis=-1)
    loss = jnp.sum(jnp.where(mask[..., None], 0.0, -onehot * logp), axis=-1)
    w = jnp.exp2(targets) if weighted else jnp.ones_like(targets)

    def sec(lo, hi):
        num = jnp.sum(loss[:, lo:hi] * w[:, lo:hi])
        den = jnp.sum(w[:, lo:hi])
        mr = jnp.mean((targets[:, lo:hi] == -100.0).astype(jnp.float32))
        return num / den, mr

    r_scs, m_scs = sec(0, 5)
    r_nfn, m_nfn = sec(5, 15)
    r_ss, m_ss = sec(15, 25)
    if not use_any:
        return (r_scs + r_nfn + r_ss) / 3.0

    any_tf = jnp.max(targets[:, :5], axis=1)
    any_pred = jnp.max(jax.nn.softmax(inputs[:, :5], axis=-1)[:, :, 2], axis=1)
    any_w = jnp.exp2(any_tf) if weighted else jnp.ones_like(any_tf)
    any_t = (any_tf == 2.0).astype(jnp.float32)
    al = -any_t * jnp.log(any_pred) - (1.0 - any_t) * jnp.log(1.0 - any_pred)
    al = jnp.nan_to_num(al, nan=0.0, posinf=0.0, neginf=0.0)
    any_loss = jnp.sum(any_w * al) / jnp.sum(any_w)
    n2n = jnp.nan_to_num
    return (n2n(r_scs), n2n(r_nfn), n2n(r_ss), n2n(any_loss), m_scs, m_nfn, m_ss, bs)


if __name__ == "__main__":
    key = jax.random.PRNGKey(0)
    k1, k2 = jax.random.split(key)
    bs = 2
    inputs = jax.random.normal(k1, (bs, 25, 3), dtype=jnp.float32)
    targets = jax.random.randint(k2, (bs, 25), 0, 3).astype(jnp.float32)
    # exercise the masked-label and missed-label paths
    targets = targets.at[0, 3].set(-1.0)
    targets = targets.at[1, 7].set(-100.0)

    # default config: eps=0.0, weighted=True, use_any=True
    out = study_loss(inputs, targets)
    out_vals = jax.block_until_ready([jnp.asarray(o) for o in out[:7]])
    ref = _ref_study_loss(inputs, targets)
    for o, r in zip(out_vals, ref[:7]):
        np.testing.assert_allclose(np.asarray(o), np.asarray(r), rtol=1e-5, atol=1e-6)
    assert out[7] == ref[7] == bs

    # label-smoothing + use_any=False branch
    out2 = jax.block_until_ready(study_loss(inputs, targets, eps=0.1, use_any=False))
    ref2 = _ref_study_loss(inputs, targets, eps=0.1, use_any=False)
    np.testing.assert_allclose(np.asarray(out2), np.asarray(ref2), rtol=1e-5, atol=1e-6)

    print("KERNEL_OK")
</pallas_src>

<mosaic_0001>
module attributes {stable_mosaic.version = 11 : i64} {
  func.func @_study_loss_kernel(%arg0: memref<3x25x2xf32, #tpu.memory_space<vmem>>, %arg1: memref<25x2xf32, #tpu.memory_space<vmem>>, %arg2: memref<10xf32, #tpu.memory_space<smem>>) attributes {dimension_semantics = [], scalar_prefetch = 0 : i64, scratch_operands = 0 : i64, tpu.core_type = #tpu.core_type<tc>} {
    %c0 = arith.constant 0 : index
    %c0_0 = arith.constant 0 : index
    %c0_1 = arith.constant 0 : index
    %0 = vector.load %arg0[%c0, %c0_0, %c0_1] : memref<3x25x2xf32, #tpu.memory_space<vmem>>, vector<1x25x2xf32>
    %1 = vector.shape_cast %0 : vector<1x25x2xf32> to vector<25x2xf32>
    %c1 = arith.constant 1 : index
    %c0_2 = arith.constant 0 : index
    %c0_3 = arith.constant 0 : index
    %2 = vector.load %arg0[%c1, %c0_2, %c0_3] : memref<3x25x2xf32, #tpu.memory_space<vmem>>, vector<1x25x2xf32>
    %3 = vector.shape_cast %2 : vector<1x25x2xf32> to vector<25x2xf32>
    %c2 = arith.constant 2 : index
    %c0_4 = arith.constant 0 : index
    %c0_5 = arith.constant 0 : index
    %4 = vector.load %arg0[%c2, %c0_4, %c0_5] : memref<3x25x2xf32, #tpu.memory_space<vmem>>, vector<1x25x2xf32>
    %5 = vector.shape_cast %4 : vector<1x25x2xf32> to vector<25x2xf32>
    %c0_6 = arith.constant 0 : index
    %c0_7 = arith.constant 0 : index
    %6 = vector.load %arg1[%c0_6, %c0_7] : memref<25x2xf32, #tpu.memory_space<vmem>>, vector<25x2xf32>
    %7 = arith.maximumf %1, %3 : vector<25x2xf32>
    %8 = arith.maximumf %7, %5 : vector<25x2xf32>
    %9 = arith.subf %1, %8 : vector<25x2xf32>
    %10 = arith.subf %3, %8 : vector<25x2xf32>
    %11 = arith.subf %5, %8 : vector<25x2xf32>
    %12 = math.exp %9 : vector<25x2xf32>
    %13 = math.exp %10 : vector<25x2xf32>
    %14 = math.exp %11 : vector<25x2xf32>
    %15 = arith.addf %12, %13 : vector<25x2xf32>
    %16 = arith.addf %15, %14 : vector<25x2xf32>
    %17 = math.log %16 : vector<25x2xf32>
    %18 = arith.subf %9, %17 : vector<25x2xf32>
    %19 = arith.subf %10, %17 : vector<25x2xf32>
    %20 = arith.subf %11, %17 : vector<25x2xf32>
    %cst = arith.constant -1.000000e+00 : f32
    %21 = vector.broadcast %cst : f32 to vector<25x2xf32>
    %22 = arith.cmpf oeq, %6, %21 : vector<25x2xf32>
    %cst_8 = arith.constant 0.000000e+00 : f32
    %23 = vector.broadcast %cst_8 : f32 to vector<25x2xf32>
    %24 = arith.maximumf %6, %23 : vector<25x2xf32>
    %cst_9 = arith.constant 0.000000e+00 : f32
    %25 = vector.broadcast %cst_9 : f32 to vector<25x2xf32>
    %26 = arith.cmpf oeq, %24, %25 : vector<25x2xf32>
    %27 = arith.extui %26 : vector<25x2xi1> to vector<25x2xi32>
    %28 = arith.sitofp %27 : vector<25x2xi32> to vector<25x2xf32>
    %cst_10 = arith.constant 1.000000e+00 : f32
    %29 = vector.broadcast %cst_10 : f32 to vector<25x2xf32>
    %30 = arith.cmpf oeq, %24, %29 : vector<25x2xf32>
    %31 = arith.extui %30 : vector<25x2xi1> to vector<25x2xi32>
    %32 = arith.sitofp %31 : vector<25x2xi32> to vector<25x2xf32>
    %cst_11 = arith.constant 2.000000e+00 : f32
    %33 = vector.broadcast %cst_11 : f32 to vector<25x2xf32>
    %34 = arith.cmpf oeq, %24, %33 : vector<25x2xf32>
    %35 = arith.extui %34 : vector<25x2xi1> to vector<25x2xi32>
    %36 = arith.sitofp %35 : vector<25x2xi32> to vector<25x2xf32>
    %37 = arith.mulf %28, %18 : vector<25x2xf32>
    %38 = arith.mulf %32, %19 : vector<25x2xf32>
    %39 = arith.addf %37, %38 : vector<25x2xf32>
    %40 = arith.mulf %36, %20 : vector<25x2xf32>
    %41 = arith.addf %39, %40 : vector<25x2xf32>
    %cst_12 = arith.constant 0.000000e+00 : f32
    %42 = vector.broadcast %cst_12 : f32 to vector<25x2xf32>
    %43 = arith.subf %42, %41 : vector<25x2xf32>
    %cst_13 = arith.constant 0.000000e+00 : f32
    %44 = vector.broadcast %cst_13 : f32 to vector<25x2xf32>
    %45 = arith.select %22, %44, %43 : vector<25x2xi1>, vector<25x2xf32>
    %46 = math.exp2 %6 : vector<25x2xf32>
    %47 = tpu.iota {dimensions = array<i32: 0>} : vector<25x2xi32>
    %c5_i32 = arith.constant 5 : i32
    %48 = vector.broadcast %c5_i32 : i32 to vector<25x2xi32>
    %49 = arith.cmpi slt, %47, %48 : vector<25x2xi32>
    %c5_i32_14 = arith.constant 5 : i32
    %50 = vector.broadcast %c5_i32_14 : i32 to vector<25x2xi32>
    %51 = arith.cmpi sge, %47, %50 : vector<25x2xi32>
    %c15_i32 = arith.constant 15 : i32
    %52 = vector.broadcast %c15_i32 : i32 to vector<25x2xi32>
    %53 = arith.cmpi slt, %47, %52 : vector<25x2xi32>
    %54 = arith.andi %51, %53 : vector<25x2xi1>
    %c15_i32_15 = arith.constant 15 : i32
    %55 = vector.broadcast %c15_i32_15 : i32 to vector<25x2xi32>
    %56 = arith.cmpi sge, %47, %55 : vector<25x2xi32>
    %57 = arith.extui %49 : vector<25x2xi1> to vector<25x2xi32>
    %58 = arith.sitofp %57 : vector<25x2xi32> to vector<25x2xf32>
    %59 = arith.extui %54 : vector<25x2xi1> to vector<25x2xi32>
    %60 = arith.sitofp %59 : vector<25x2xi32> to vector<25x2xf32>
    %61 = arith.extui %56 : vector<25x2xi1> to vector<25x2xi32>
    %62 = arith.sitofp %61 : vector<25x2xi32> to vector<25x2xf32>
    %63 = arith.mulf %45, %46 : vector<25x2xf32>
    %cst_16 = arith.constant -1.000000e+02 : f32
    %64 = vector.broadcast %cst_16 : f32 to vector<25x2xf32>
    %65 = arith.cmpf oeq, %6, %64 : vector<25x2xf32>
    %66 = arith.extui %65 : vector<25x2xi1> to vector<25x2xi32>
    %67 = arith.sitofp %66 : vector<25x2xi32> to vector<25x2xf32>
    %68 = arith.mulf %63, %58 : vector<25x2xf32>
    %69 = vector.shape_cast %68 : vector<25x2xf32> to vector<1x25x2xf32>
    %cst_17 = arith.constant dense<0.000000e+00> : vector<1xf32>
    %70 = vector.multi_reduction <add>, %69, %cst_17 [1, 2] : vector<1x25x2xf32> to vector<1xf32>
    %71 = vector.shape_cast %70 : vector<1xf32> to vector<1x1x1xf32>
    %72 = vector.extract %71[0, 0, 0] : f32 from vector<1x1x1xf32>
    %73 = arith.mulf %46, %58 : vector<25x2xf32>
    %74 = vector.shape_cast %73 : vector<25x2xf32> to vector<1x25x2xf32>
    %cst_18 = arith.constant dense<0.000000e+00> : vector<1xf32>
    %75 = vector.multi_reduction <add>, %74, %cst_18 [1, 2] : vector<1x25x2xf32> to vector<1xf32>
    %76 = vector.shape_cast %75 : vector<1xf32> to vector<1x1x1xf32>
    %77 = vector.extract %76[0, 0, 0] : f32 from vector<1x1x1xf32>
    %78 = arith.divf %72, %77 : f32
    %79 = arith.mulf %67, %58 : vector<25x2xf32>
    %80 = vector.shape_cast %79 : vector<25x2xf32> to vector<1x25x2xf32>
    %cst_19 = arith.constant dense<0.000000e+00> : vector<1xf32>
    %81 = vector.multi_reduction <add>, %80, %cst_19 [1, 2] : vector<1x25x2xf32> to vector<1xf32>
    %82 = vector.shape_cast %81 : vector<1xf32> to vector<1x1x1xf32>
    %83 = vector.extract %82[0, 0, 0] : f32 from vector<1x1x1xf32>
    %cst_20 = arith.constant 1.000000e+01 : f32
    %84 = arith.divf %83, %cst_20 : f32
    %85 = arith.mulf %63, %60 : vector<25x2xf32>
    %86 = vector.shape_cast %85 : vector<25x2xf32> to vector<1x25x2xf32>
    %cst_21 = arith.constant dense<0.000000e+00> : vector<1xf32>
    %87 = vector.multi_reduction <add>, %86, %cst_21 [1, 2] : vector<1x25x2xf32> to vector<1xf32>
    %88 = vector.shape_cast %87 : vector<1xf32> to vector<1x1x1xf32>
    %89 = vector.extract %88[0, 0, 0] : f32 from vector<1x1x1xf32>
    %90 = arith.mulf %46, %60 : vector<25x2xf32>
    %91 = vector.shape_cast %90 : vector<25x2xf32> to vector<1x25x2xf32>
    %cst_22 = arith.constant dense<0.000000e+00> : vector<1xf32>
    %92 = vector.multi_reduction <add>, %91, %cst_22 [1, 2] : vector<1x25x2xf32> to vector<1xf32>
    %93 = vector.shape_cast %92 : vector<1xf32> to vector<1x1x1xf32>
    %94 = vector.extract %93[0, 0, 0] : f32 from vector<1x1x1xf32>
    %95 = arith.divf %89, %94 : f32
    %96 = arith.mulf %67, %60 : vector<25x2xf32>
    %97 = vector.shape_cast %96 : vector<25x2xf32> to vector<1x25x2xf32>
    %cst_23 = arith.constant dense<0.000000e+00> : vector<1xf32>
    %98 = vector.multi_reduction <add>, %97, %cst_23 [1, 2] : vector<1x25x2xf32> to vector<1xf32>
    %99 = vector.shape_cast %98 : vector<1xf32> to vector<1x1x1xf32>
    %100 = vector.extract %99[0, 0, 0] : f32 from vector<1x1x1xf32>
    %cst_24 = arith.constant 2.000000e+01 : f32
    %101 = arith.divf %100, %cst_24 : f32
    %102 = arith.mulf %63, %62 : vector<25x2xf32>
    %103 = vector.shape_cast %102 : vector<25x2xf32> to vector<1x25x2xf32>
    %cst_25 = arith.constant dense<0.000000e+00> : vector<1xf32>
    %104 = vector.multi_reduction <add>, %103, %cst_25 [1, 2] : vector<1x25x2xf32> to vector<1xf32>
    %105 = vector.shape_cast %104 : vector<1xf32> to vector<1x1x1xf32>
    %106 = vector.extract %105[0, 0, 0] : f32 from vector<1x1x1xf32>
    %107 = arith.mulf %46, %62 : vector<25x2xf32>
    %108 = vector.shape_cast %107 : vector<25x2xf32> to vector<1x25x2xf32>
    %cst_26 = arith.constant dense<0.000000e+00> : vector<1xf32>
    %109 = vector.multi_reduction <add>, %108, %cst_26 [1, 2] : vector<1x25x2xf32> to vector<1xf32>
    %110 = vector.shape_cast %109 : vector<1xf32> to vector<1x1x1xf32>
    %111 = vector.extract %110[0, 0, 0] : f32 from vector<1x1x1xf32>
    %112 = arith.divf %106, %111 : f32
    %113 = arith.mulf %67, %62 : vector<25x2xf32>
    %114 = vector.shape_cast %113 : vector<25x2xf32> to vector<1x25x2xf32>
    %cst_27 = arith.constant dense<0.000000e+00> : vector<1xf32>
    %115 = vector.multi_reduction <add>, %114, %cst_27 [1, 2] : vector<1x25x2xf32> to vector<1xf32>
    %116 = vector.shape_cast %115 : vector<1xf32> to vector<1x1x1xf32>
    %117 = vector.extract %116[0, 0, 0] : f32 from vector<1x1x1xf32>
    %cst_28 = arith.constant 2.000000e+01 : f32
    %118 = arith.divf %117, %cst_28 : f32
    %cst_29 = arith.constant 0xFF800000 : f32
    %119 = vector.broadcast %cst_29 : f32 to vector<25x2xf32>
    %120 = arith.select %49, %6, %119 : vector<25x2xi1>, vector<25x2xf32>
    %cst_30 = arith.constant dense<0xFF800000> : vector<2xf32>
    %121 = vector.multi_reduction <maximumf>, %120, %cst_30 [0] : vector<25x2xf32> to vector<2xf32>
    %122 = vector.shape_cast %121 : vector<2xf32> to vector<1x2xf32>
    %123 = arith.divf %14, %16 : vector<25x2xf32>
    %cst_31 = arith.constant 0xFF800000 : f32
    %124 = vector.broadcast %cst_31 : f32 to vector<25x2xf32>
    %125 = arith.select %49, %123, %124 : vector<25x2xi1>, vector<25x2xf32>
    %cst_32 = arith.constant dense<0xFF800000> : vector<2xf32>
    %126 = vector.multi_reduction <maximumf>, %125, %cst_32 [0] : vector<25x2xf32> to vector<2xf32>
    %127 = vector.shape_cast %126 : vector<2xf32> to vector<1x2xf32>
    %cst_33 = arith.constant 0.000000e+00 : f32
    %128 = vector.broadcast %cst_33 : f32 to vector<25x2xf32>
    %129 = arith.select %49, %46, %128 : vector<25x2xi1>, vector<25x2xf32>
    %cst_34 = arith.constant dense<0xFF800000> : vector<2xf32>
    %130 = vector.multi_reduction <maximumf>, %129, %cst_34 [0] : vector<25x2xf32> to vector<2xf32>
    %131 = vector.shape_cast %130 : vector<2xf32> to vector<1x2xf32>
    %cst_35 = arith.constant 2.000000e+00 : f32
    %132 = vector.broadcast %cst_35 : f32 to vector<1x2xf32>
    %133 = arith.cmpf oeq, %122, %132 : vector<1x2xf32>
    %134 = arith.extui %133 : vector<1x2xi1> to vector<1x2xi32>
    %135 = arith.sitofp %134 : vector<1x2xi32> to vector<1x2xf32>
    %cst_36 = arith.constant 0.000000e+00 : f32
    %136 = vector.broadcast %cst_36 : f32 to vector<1x2xf32>
    %137 = arith.subf %136, %135 : vector<1x2xf32>
    %138 = math.log %127 : vector<1x2xf32>
    %139 = arith.mulf %137, %138 : vector<1x2xf32>
    %cst_37 = arith.constant 1.000000e+00 : f32
    %140 = vector.broadcast %cst_37 : f32 to vector<1x2xf32>
    %141 = arith.subf %140, %135 : vector<1x2xf32>
    %cst_38 = arith.constant 1.000000e+00 : f32
    %142 = vector.broadcast %cst_38 : f32 to vector<1x2xf32>
    %143 = arith.subf %142, %127 : vector<1x2xf32>
    %144 = math.log %143 : vector<1x2xf32>
    %145 = arith.mulf %141, %144 : vector<1x2xf32>
    %146 = arith.subf %139, %145 : vector<1x2xf32>
    %147 = arith.cmpf one, %146, %146 : vector<1x2xf32>
    %cst_39 = arith.constant 0.000000e+00 : f32
    %148 = vector.broadcast %cst_39 : f32 to vector<1x2xf32>
    %149 = arith.select %147, %148, %146 : vector<1x2xi1>, vector<1x2xf32>
    %cst_40 = arith.constant 0x7F800000 : f32
    %150 = vector.broadcast %cst_40 : f32 to vector<1x2xf32>
    %151 = arith.cmpf oeq, %149, %150 : vector<1x2xf32>
    %cst_41 = arith.constant 0.000000e+00 : f32
    %152 = vector.broadcast %cst_41 : f32 to vector<1x2xf32>
    %153 = arith.select %151, %152, %149 : vector<1x2xi1>, vector<1x2xf32>
    %cst_42 = arith.constant 0xFF800000 : f32
    %154 = vector.broadcast %cst_42 : f32 to vector<1x2xf32>
    %155 = arith.cmpf oeq, %153, %154 : vector<1x2xf32>
    %cst_43 = arith.constant 0.000000e+00 : f32
    %156 = vector.broadcast %cst_43 : f32 to vector<1x2xf32>
    %157 = arith.select %155, %156, %153 : vector<1x2xi1>, vector<1x2xf32>
    %158 = arith.mulf %131, %157 : vector<1x2xf32>
    %159 = vector.shape_cast %158 : vector<1x2xf32> to vector<1x1x2xf32>
    %cst_44 = arith.constant dense<0.000000e+00> : vector<1xf32>
    %160 = vector.multi_reduction <add>, %159, %cst_44 [1, 2] : vector<1x1x2xf32> to vector<1xf32>
    %161 = vector.shape_cast %160 : vector<1xf32> to vector<1x1x1xf32>
    %162 = vector.extract %161[0, 0, 0] : f32 from vector<1x1x1xf32>
    %163 = vector.shape_cast %131 : vector<1x2xf32> to vector<1x1x2xf32>
    %cst_45 = arith.constant dense<0.000000e+00> : vector<1xf32>
    %164 = vector.multi_reduction <add>, %163, %cst_45 [1, 2] : vector<1x1x2xf32> to vector<1xf32>
    %165 = vector.shape_cast %164 : vector<1xf32> to vector<1x1x1xf32>
    %166 = vector.extract %165[0, 0, 0] : f32 from vector<1x1x1xf32>
    %167 = arith.divf %162, %166 : f32
    %168 = arith.cmpf one, %78, %78 : f32
    %cst_46 = arith.constant 0.000000e+00 : f32
    %169 = arith.select %168, %cst_46, %78 : f32
    %cst_47 = arith.constant 0x7F800000 : f32
    %170 = arith.cmpf oeq, %169, %cst_47 : f32
    %cst_48 = arith.constant 3.40282347E+38 : f32
    %171 = arith.select %170, %cst_48, %169 : f32
    %cst_49 = arith.constant 0xFF800000 : f32
    %172 = arith.cmpf oeq, %171, %cst_49 : f32
    %cst_50 = arith.constant -3.40282347E+38 : f32
    %173 = arith.select %172, %cst_50, %171 : f32
    %c0_51 = arith.constant 0 : index
    %174 = memref.load %arg2[%c0_51] : memref<10xf32, #tpu.memory_space<smem>>
    memref.store %173, %arg2[%c0_51] : memref<10xf32, #tpu.memory_space<smem>>
    %175 = arith.cmpf one, %95, %95 : f32
    %cst_52 = arith.constant 0.000000e+00 : f32
    %176 = arith.select %175, %cst_52, %95 : f32
    %cst_53 = arith.constant 0x7F800000 : f32
    %177 = arith.cmpf oeq, %176, %cst_53 : f32
    %cst_54 = arith.constant 3.40282347E+38 : f32
    %178 = arith.select %177, %cst_54, %176 : f32
    %cst_55 = arith.constant 0xFF800000 : f32
    %179 = arith.cmpf oeq, %178, %cst_55 : f32
    %cst_56 = arith.constant -3.40282347E+38 : f32
    %180 = arith.select %179, %cst_56, %178 : f32
    %c1_57 = arith.constant 1 : index
    %181 = memref.load %arg2[%c1_57] : memref<10xf32, #tpu.memory_space<smem>>
    memref.store %180, %arg2[%c1_57] : memref<10xf32, #tpu.memory_space<smem>>
    %182 = arith.cmpf one, %112, %112 : f32
    %cst_58 = arith.constant 0.000000e+00 : f32
    %183 = arith.select %182, %cst_58, %112 : f32
    %cst_59 = arith.constant 0x7F800000 : f32
    %184 = arith.cmpf oeq, %183, %cst_59 : f32
    %cst_60 = arith.constant 3.40282347E+38 : f32
    %185 = arith.select %184, %cst_60, %183 : f32
    %cst_61 = arith.constant 0xFF800000 : f32
    %186 = arith.cmpf oeq, %185, %cst_61 : f32
    %cst_62 = arith.constant -3.40282347E+38 : f32
    %187 = arith.select %186, %cst_62, %185 : f32
    %c2_63 = arith.constant 2 : index
    %188 = memref.load %arg2[%c2_63] : memref<10xf32, #tpu.memory_space<smem>>
    memref.store %187, %arg2[%c2_63] : memref<10xf32, #tpu.memory_space<smem>>
    %189 = arith.cmpf one, %167, %167 : f32
    %cst_64 = arith.constant 0.000000e+00 : f32
    %190 = arith.select %189, %cst_64, %167 : f32
    %cst_65 = arith.constant 0x7F800000 : f32
    %191 = arith.cmpf oeq, %190, %cst_65 : f32
    %cst_66 = arith.constant 3.40282347E+38 : f32
    %192 = arith.select %191, %cst_66, %190 : f32
    %cst_67 = arith.constant 0xFF800000 : f32
    %193 = arith.cmpf oeq, %192, %cst_67 : f32
    %cst_68 = arith.constant -3.40282347E+38 : f32
    %194 = arith.select %193, %cst_68, %192 : f32
    %c3 = arith.constant 3 : index
    %195 = memref.load %arg2[%c3] : memref<10xf32, #tpu.memory_space<smem>>
    memref.store %194, %arg2[%c3] : memref<10xf32, #tpu.memory_space<smem>>
    %c4 = arith.constant 4 : index
    %196 = memref.load %arg2[%c4] : memref<10xf32, #tpu.memory_space<smem>>
    memref.store %84, %arg2[%c4] : memref<10xf32, #tpu.memory_space<smem>>
    %c5 = arith.constant 5 : index
    %197 = memref.load %arg2[%c5] : memref<10xf32, #tpu.memory_space<smem>>
    memref.store %101, %arg2[%c5] : memref<10xf32, #tpu.memory_space<smem>>
    %c6 = arith.constant 6 : index
    %198 = memref.load %arg2[%c6] : memref<10xf32, #tpu.memory_space<smem>>
    memref.store %118, %arg2[%c6] : memref<10xf32, #tpu.memory_space<smem>>
    %c7 = arith.constant 7 : index
    %199 = memref.load %arg2[%c7] : memref<10xf32, #tpu.memory_space<smem>>
    memref.store %78, %arg2[%c7] : memref<10xf32, #tpu.memory_space<smem>>
    %c8 = arith.constant 8 : index
    %200 = memref.load %arg2[%c8] : memref<10xf32, #tpu.memory_space<smem>>
    memref.store %95, %arg2[%c8] : memref<10xf32, #tpu.memory_space<smem>>
    %c9 = arith.constant 9 : index
    %201 = memref.load %arg2[%c9] : memref<10xf32, #tpu.memory_space<smem>>
    memref.store %112, %arg2[%c9] : memref<10xf32, #tpu.memory_space<smem>>
    return
  }
}

</mosaic_0001>

<bundles_post_ra>
// kernel: tpu_custom_call.1
= control target key start
LH: loop header
LB: loop body
LE: loop exit
PB: predicated region body
PF: predicated region fallthrough
CT: control target
= control target key end

     0   :  { %s1066_s0 = inlined_call_operand.vmem [shape: f32[3,25,2], index: 0, kind: input, shape index: {}]   ;;  %s1067_s1 = inlined_call_operand.vmem [shape: f32[25,2], index: 1, kind: input, shape index: {}]   ;;  %s1068_s2 = inlined_call_operand.hbm [shape: f32[10], index: 2, kind: output, shape index: {}]  }
   0x1   :  { %v12_v0 = vld [vmem:[%s1066_s0] sm:$0xff]  ;;  %v13_v1 = vld [vmem:[%s1066_s0 + $0x8] sm:$0xff]  ;;  %v14_v2 = vld [vmem:[%s1066_s0 + $0x10] sm:$0xff] }
   0x2   :  { %v15_v3 = vld [vmem:[%s1066_s0 + $0x18] sm:$0x1]  ;;  %v606_v4 = vld [vmem:[%s1066_s0 + $0x20] sm:$0xff]  ;;  %v607_v5 = vld [vmem:[%s1066_s0 + $0x28] sm:$0xff] }
   0x3   :  { %v608_v6 = vld [vmem:[%s1066_s0 + $0x30] sm:$0xff]  ;;  %v609_v7 = vld [vmem:[%s1066_s0 + $0x38] sm:$0x1]  ;;  %v610_v8 = vld [vmem:[%s1066_s0 + $0x40] sm:$0xff]  ;;  %v30_v9 = vmax.f32 %v12_v0, %v606_v4  ;;  %v31_v10 = vmax.f32 %v13_v1, %v607_v5 }
   0x4   :  { %v611_v11 = vld [vmem:[%s1066_s0 + $0x48] sm:$0xff]  ;;  %v612_v12 = vld [vmem:[%s1066_s0 + $0x50] sm:$0xff]  ;;  %v613_v13 = vld [vmem:[%s1066_s0 + $0x58] sm:$0x1]  ;;  %v32_v14 = vmax.f32 %v14_v2, %v608_v6  ;;  %v33_v15 = vmax.f32 %v15_v3, %v609_v7 }
   0x5   :  { %v34_v16 = vmax.f32 %v30_v9, %v610_v8  ;;  %v35_v17 = vmax.f32 %v31_v10, %v611_v11 }
   0x6   :  { %v36_v18 = vmax.f32 %v32_v14, %v612_v12  ;;  %v37_v19 = vmax.f32 %v33_v15, %v613_v13 }
   0x7   :  { %7 = vsyncpa [#allocation3], 0  ;;  %v788_v20 = vsub.f32 %v12_v0, %v34_v16  ;;  %v790_v21 = vsub.f32 %v13_v1, %v35_v17  ;;  %v796_v24 = vsub.f32 %v606_v4, %v34_v16  ;;  %v798_v25 = vsub.f32 %v607_v5, %v35_v17  ;;  %v829_v49 = vld [vmem:[%s1067_s1] sm:$0xff]  ;;  %v834_v51 = vld [vmem:[%s1067_s1 + $0x8] sm:$0xff]  ;;  %s722_s6 = scalar_lea.hbm %s1068_s2, 16 }
   0x8   :  { %v792_v22 = vsub.f32 %v14_v2, %v36_v18  ;;  %v794_v23 = vsub.f32 %v15_v3, %v37_v19  ;;  %v800_v26 = vsub.f32 %v608_v6, %v36_v18  ;;  %v805_v30 = vsub.f32 %v609_v7, %v37_v19  ;;  %v839_v52 = vld [vmem:[%s1067_s1 + $0x10] sm:$0xff]  ;;  %v847_v54 = vld [vmem:[%s1067_s1 + $0x18] sm:$0x1]  ;;  %p723_p12 = scmp.ne.s32.totalorder %s1068_s2, %s722_s6  ;;  %p726_p13 = scmp.lt.u32.totalorder %s722_s6, %s1068_s2 }
   0x9   :  { %v50_v27 = vmul.f32 1.442695, %v788_v20  ;;  %v52_v28 = vmul.f32 1.442695, %v790_v21  ;;  %v808_v32 = vsub.f32 %v610_v8, %v34_v16  ;;  %v58_v33 = vmul.f32 1.442695, %v796_v24 }
   0xa   :  { %v54_v29 = vmul.f32 1.442695, %v792_v22  ;;  %v56_v31 = vmul.f32 1.442695, %v794_v23  ;;  %v811_v34 = vsub.f32 %v611_v11, %v35_v17  ;;  %v60_v35 = vmul.f32 1.442695, %v798_v25 }
   0xb   :  { %668 = vpow2.f32 %v50_v27  ;;  %v814_v36 = vsub.f32 %v612_v12, %v36_v18  ;;  %v62_v37 = vmul.f32 1.442695, %v800_v26  ;;  %v817_v38 = vsub.f32 %v613_v13, %v37_v19 }
   0xc   :  { %670 = vpow2.f32 %v52_v28  ;;  %v64_v39 = vmul.f32 1.442695, %v805_v30  ;;  %v66_v40 = vmul.f32 1.442695, %v808_v32  ;;  %v68_v41 = vmul.f32 1.442695, %v811_v34 }
   0xd   :  { %672 = vpow2.f32 %v54_v29  ;;  %v178_v42 = vlaneseq  ;;  %v70_v43 = vmul.f32 1.442695, %v814_v36  ;;  %v72_v44 = vmul.f32 1.442695, %v817_v38 }
   0xe   :  { %674 = vpow2.f32 %v56_v31  ;;  %vm247_vm1 = vcmask 15360   ;;  %vm231_vm2 = vcmp.eq.f32.partialorder %v829_v49, -100.0  ;;  %vm253_vm3 = vcmask 8192  }
   0xf   :  { %676 = vpow2.f32 %v58_v33  ;;  %v824_v45 = vshrl.u32 %v178_v42, 7  ;;  %vm232_vm4 = vcmp.eq.f32.partialorder %v834_v51, -100.0  ;;  %vm233_vm5 = vcmp.eq.f32.partialorder %v839_v52, -100.0 }
  0x10   :  { %678 = vpow2.f32 %v60_v35  ;;  %v853_v57 = vmax.f32 %v829_v49, 0.0  ;;  %vm234_vm6 = vcmp.eq.f32.partialorder %v847_v54, -100.0  ;;  %v1069_v58 = vmov 0.0  }
  0x11   :  { %680 = vpow2.f32 %v62_v37  ;;  %vm183_vm0 = vcmp.lt.s32.totalorder %v824_v45, 5  ;;  %v857_v59 = vsel %vm231_vm2, 1.0, %v1069_v58  ;;  %v865_v63 = vsel %vm232_vm4, 1.0, %v1069_v58 }
  0x12   :  { %682 = vpow2.f32 %v64_v39  ;;  %v862_v62 = vsel %vm183_vm0, 1.0, %v1069_v58  ;;  %v868_v0 = vsel %vm233_vm5, 1.0, %v1069_v58  ;;  %v871_v3 = vsel %vm234_vm6, 1.0, %v1069_v58 }
  0x13   :  { %684 = vpow2.f32 %v66_v40  ;;  %1073 = vst [vmem:[#allocation5_spill] sm:$0xff] %v868_v0  ;;  %1074 = vst [vmem:[#allocation6_spill] sm:$0xff] %v871_v3  ;;  %v289_v4 = vmul.f32 %v857_v59, %v862_v62  ;;  %v290_v5 = vmul.f32 0.0, %v865_v63  ;;  %v107_v8 = vmax.f32 %v834_v51, 0.0 }
  0x14   :  { %686 = vpow2.f32 %v68_v41  ;;  %v291_v9 = vmul.f32 0.0, %v868_v0  ;;  %v292_v10 = vmul.f32 0.0, %v871_v3  ;;  %v108_v13 = vmax.f32 %v839_v52, 0.0 }
  0x15   :  { %v669_v46 = vpop.eup %668  ;;  %688 = vpow2.f32 %v70_v43  ;;  %v293_v14 = vsel %vm247_vm1, %v289_v4, 0.0  ;;  %v294_v15 = vsel %vm247_vm1, %v290_v5, 0.0  ;;  %v109_v29 = vmax.f32 %v847_v54, 0.0 }
  0x16   :  { %v671_v47 = vpop.eup %670  ;;  %690 = vpow2.f32 %v72_v44  ;;  %v295_v18 = vadd.f32 %v294_v15, %v293_v14  ;;  %v889_v19 = vsel %vm247_vm1, %v291_v9, 0.0  ;;  %v894_v31 = vsel %vm253_vm3, %v292_v10, 0.0 }
  0x17   :  { %v673_v48 = vpop.eup %672  ;;  %692 = vpow2.f32 %v829_v49  ;;  %v898_v37 = vadd.s32 8, %v824_v45  ;;  %vm110_vm7 = vcmp.eq.f32.partialorder %v853_v57, 0.0  ;;  %vm111_vm8 = vcmp.eq.f32.partialorder %v107_v8, 0.0 }
  0x18   :  { %v675_v50 = vpop.eup %674  ;;  %694 = vpow2.f32 %v834_v51  ;;  %v297_v35 = vadd.f32 %v889_v19, %v295_v18  ;;  %vm112_vm9 = vcmp.eq.f32.partialorder %v108_v13, 0.0  ;;  %vm113_vm10 = vcmp.eq.f32.partialorder %v109_v29, 0.0 }
  0x19   :  { %v677_v53 = vpop.eup %676  ;;  %696 = vpow2.f32 %v839_v52  ;;  %vm122_vm11 = vcmp.eq.f32.partialorder %v853_v57, 1.0  ;;  %v614_v44 = vsel %vm110_vm7, 1.0, %v1069_v58  ;;  %vm134_vm12 = vcmp.eq.f32.partialorder %v853_v57, 2.0 }
  0x1a   :  { %v679_v55 = vpop.eup %678  ;;  %v74_v56 = vadd.f32 %v677_v53, %v669_v46  ;;  %v299_v41 = vadd.f32 %v894_v31, %v297_v35  ;;  %v615_v46 = vsel %vm111_vm8, 1.0, %v1069_v58  ;;  %vm123_vm13 = vcmp.eq.f32.partialorder %v107_v8, 1.0 }
  0x1b   :  { %v681_v60 = vpop.eup %680  ;;  %v75_v61 = vadd.f32 %v679_v55, %v671_v47  ;;  %v616_v47 = vsel %vm112_vm9, 1.0, %v1069_v58  ;;  %vm124_vm14 = vcmp.eq.f32.partialorder %v108_v13, 1.0  ;;  %vm187_vm15 = vcmp.ge.s32.totalorder %v824_v45, 5 }
  0x1c   :  { %v683_v1 = vpop.eup %682  ;;  %v76_v2 = vadd.f32 %v681_v60, %v673_v48  ;;  %300 = vadd.xlane.f32.xlu1 %v299_v41  ;;  %vm192_vm2 = vcmp.lt.s32.totalorder %v898_v37, 15  ;;  %v617_v48 = vsel %vm113_vm10, 1.0, %v1069_v58  ;;  %vm125_vm4 = vcmp.eq.f32.partialorder %v109_v29, 1.0 }
  0x1d   :  { %v876_v6 = vpop.eup %684  ;;  %v77_v7 = vadd.f32 %v683_v1, %v675_v50  ;;  %vm135_vm5 = vcmp.eq.f32.partialorder %v107_v8, 2.0  ;;  %vm136_vm6 = vcmp.eq.f32.partialorder %v108_v13, 2.0  ;;  %v618_v50 = vsel %vm122_vm11, 1.0, %v1069_v58 }
  0x1e   :  { %v687_v11 = vpop.eup %686  ;;  %v882_v12 = vadd.f32 %v876_v6, %v74_v56  ;;  %vm137_vm7 = vcmp.eq.f32.partialorder %v109_v29, 2.0  ;;  %v619_v60 = vsel %vm123_vm13, 1.0, %v1069_v58  ;;  %v927_v1 = vsel %vm187_vm15, 1.0, %v1069_v58 }
  0x1f   :  { %v689_v16 = vpop.eup %688  ;;  %v79_v17 = vadd.f32 %v687_v11, %v75_v61  ;;  %v620_v61 = vsel %vm124_vm14, 1.0, %v1069_v58  ;;  %v621_v5 = vsel %vm125_vm4, 1.0, %v1069_v58  ;;  %v623_v8 = vsel %vm135_vm5, 1.0, %v1069_v58 }
  0x20   :  { %v691_v27 = vpop.eup %690  ;;  %v80_v28 = vadd.f32 %v689_v16, %v76_v2  ;;  %698 = vlog2.f32 %v882_v12  ;;  %v930_v2 = vsel %vm192_vm2, 1.0, %v1069_v58  ;;  %v624_v9 = vsel %vm136_vm6, 1.0, %v1069_v58 }
  0x21   :  { %v81_v33 = vadd.f32 %v691_v27, %v77_v7  ;;  %700 = vlog2.f32 %v79_v17  ;;  %v900_v39 = vpop.eup %692  ;;  %v622_v7 = vsel %vm134_vm12, 1.0, %v1069_v58  ;;  %v625_v13 = vsel %vm137_vm7, 1.0, %v1069_v58 }
  0x22   :  { %702 = vlog2.f32 %v80_v28  ;;  %v903_v40 = vpop.eup %694  ;;  %v265_v42 = vmul.f32 %v900_v39, %v862_v62  ;;  %v332_v57 = vmul.f32 %v900_v39, %v927_v1  ;;  %vm102_vm8 = vcmp.eq.f32.partialorder %v829_v49, -1.0 }
  0x23   :  { %704 = vlog2.f32 %v81_v33  ;;  %v266_v43 = vmul.f32 0.0, %v903_v40  ;;  %v922_v56 = vpop.eup %696  ;;  %v333_v18 = vmul.f32 %v903_v40, %v930_v2  ;;  %vm103_vm9 = vcmp.eq.f32.partialorder %v834_v51, -1.0 }
  0x24   :  { %v269_v53 = vsel %vm247_vm1, %v265_v42, 0.0  ;;  %706 = vpow2.f32 %v847_v54  ;;  %v267_v17 = vmul.f32 0.0, %v922_v56  ;;  %vm104_vm10 = vcmp.eq.f32.partialorder %v839_v52, -1.0 }
  0x25   :  { %v270_v55 = vsel %vm247_vm1, %v266_v43, 0.0  ;;  %vm105_vm11 = vcmp.eq.f32.partialorder %v847_v54, -1.0  ;;  %vm200_vm12 = vcmp.ge.s32.totalorder %v898_v37, 15  ;;  %708 = vrcp.f32 %v882_v12 }
  0x26   :  { %v940_v14 = vadd.f32 %v270_v55, %v269_v53  ;;  %v399_v51 = vmul.f32 0.0, %v900_v39 }
  0x2a   :  { %v699_v4 = vpop.eup %698 }
  0x2b   :  { %v701_v10 = vpop.eup %700  ;;  %v83_v11 = vmul.f32 0.6931472, %v699_v4 }
  0x2c   :  { %v703_v15 = vpop.eup %702  ;;  %v85_v16 = vmul.f32 0.6931472, %v701_v10 }
  0x2d   :  { %v705_v27 = vpop.eup %704  ;;  %v87_v28 = vmul.f32 0.6931472, %v703_v15  ;;  %v90_v29 = vsub.f32 %v788_v20, %v83_v11  ;;  %v94_v33 = vsub.f32 %v796_v24, %v83_v11  ;;  %v98_v35 = vsub.f32 %v808_v32, %v83_v11 }
  0x2e   :  { %v89_v41 = vmul.f32 0.6931472, %v705_v27  ;;  %v91_v42 = vsub.f32 %v790_v21, %v85_v16  ;;  %v95_v43 = vsub.f32 %v798_v25, %v85_v16  ;;  %v99_v53 = vsub.f32 %v811_v34, %v85_v16 }
  0x2f   :  { %v92_v55 = vsub.f32 %v792_v22, %v87_v28  ;;  %v96_v20 = vsub.f32 %v800_v26, %v87_v28  ;;  %v100_v24 = vsub.f32 %v814_v36, %v87_v28  ;;  %v146_v32 = vmul.f32 %v614_v44, %v90_v29 }
  0x30   :  { %v93_v21 = vsub.f32 %v794_v23, %v89_v41  ;;  %v97_v25 = vsub.f32 %v805_v30, %v89_v41  ;;  %v101_v34 = vsub.f32 %v817_v38, %v89_v41  ;;  %v147_v4 = vmul.f32 %v615_v46, %v91_v42  ;;  %v967_v38 = vpop.eup %706 }
  0x31   :  { %v148_v10 = vmul.f32 %v616_v47, %v92_v55  ;;  %v150_v11 = vmul.f32 %v618_v50, %v94_v33  ;;  %v151_v15 = vmul.f32 %v619_v60, %v95_v43  ;;  %v152_v16 = vmul.f32 %v620_v61, %v96_v20 }
  0x32   :  { %v149_v27 = vmul.f32 %v617_v48, %v93_v21  ;;  %v153_v22 = vmul.f32 %v621_v5, %v97_v25  ;;  %v158_v58 = vmul.f32 %v622_v7, %v98_v35  ;;  %v159_v26 = vmul.f32 %v623_v8, %v99_v53 }
  0x33   :  { %v154_v3 = vadd.f32 %v150_v11, %v146_v32  ;;  %v155_v36 = vadd.f32 %v151_v15, %v147_v4  ;;  %v156_v28 = vadd.f32 %v152_v16, %v148_v10  ;;  %v160_v0 = vmul.f32 %v624_v9, %v100_v24 }
  0x34   :  { %v157_v44 = vadd.f32 %v153_v22, %v149_v27  ;;  %v161_v29 = vmul.f32 %v625_v13, %v101_v34  ;;  %v356_v23 = vmul.f32 %v857_v59, %v927_v1  ;;  %v357_v30 = vmul.f32 %v865_v63, %v930_v2  ;;  %v709_v27 = vpop.eup %708 }
  0x35   :  { %v162_v46 = vadd.f32 %v158_v58, %v154_v3  ;;  %v163_v47 = vadd.f32 %v159_v26, %v155_v36  ;;  %v164_v48 = vadd.f32 %v160_v0, %v156_v28  ;;  %v268_v60 = vmul.f32 0.0, %v967_v38 }
  0x36   :  { %v165_v50 = vadd.f32 %v161_v29, %v157_v44  ;;  %v336_v61 = vsel %vm247_vm1, %v332_v57, 0.0  ;;  %v272_v9 = vsel %vm247_vm1, %v267_v17, 0.0  ;;  %v360_v33 = vsel %vm247_vm1, %v356_v23, 0.0 }
  0x37   :  { %v166_v5 = vsub.f32 0.0, %v162_v46  ;;  %v167_v7 = vsub.f32 0.0, %v163_v47  ;;  %v168_v8 = vsub.f32 0.0, %v164_v48  ;;  %v361_v58 = vsel %vm247_vm1, %v357_v30, 0.0 }
  0x38   :  { %v169_v13 = vsub.f32 0.0, %v165_v50  ;;  %v1075_v0 = vmov 0.0   ;;  %v337_v35 = vsel %vm247_vm1, %v333_v18, 0.0  ;;  %v362_v55 = vadd.f32 %v361_v58, %v360_v33 }
  0x39   :  { %v977_v3 = vsel %vm200_vm12, 1.0, %v1075_v0  ;;  %v170_v12 = vsel %vm102_vm8, 0.0, %v166_v5  ;;  %v171_v37 = vsel %vm103_vm9, 0.0, %v167_v7  ;;  %v172_v57 = vsel %vm104_vm10, 0.0, %v168_v8 }
  0x3a   :  { %v173_v17 = vsel %vm105_vm11, 0.0, %v169_v13  ;;  %v227_v41 = vmul.f32 %v900_v39, %v170_v12  ;;  %v228_v42 = vmul.f32 %v903_v40, %v171_v37  ;;  %v229_v43 = vmul.f32 %v922_v56, %v172_v57 }
  0x3b   :  { %v230_v53 = vmul.f32 %v967_v38, %v173_v17  ;;  %v400_v52 = vmul.f32 %v903_v40, %v977_v3  ;;  %v403_v16 = vsel %vm247_vm1, %v399_v51, 0.0  ;;  %v273_v22 = vadd.f32 %v272_v9, %v940_v14 }
  0x3c   :  { %v243_v20 = vmul.f32 %v862_v62, %v227_v41  ;;  %v244_v18 = vmul.f32 0.0, %v228_v42  ;;  %v245_v24 = vmul.f32 0.0, %v229_v43  ;;  %v312_v54 = vmul.f32 %v927_v1, %v227_v41 }
  0x3d   :  { %v246_v32 = vmul.f32 0.0, %v230_v53  ;;  %v313_v21 = vmul.f32 %v930_v2, %v228_v42  ;;  %v379_v25 = vmul.f32 0.0, %v227_v41  ;;  %v380_v34 = vmul.f32 %v977_v3, %v228_v42 }
  0x3e   :  { %v248_v4 = vsel %vm247_vm1, %v243_v20, 0.0  ;;  %v249_v10 = vsel %vm247_vm1, %v244_v18, 0.0  ;;  %v251_v11 = vsel %vm247_vm1, %v245_v24, 0.0  ;;  %v316_v40 = vsel %vm247_vm1, %v312_v54, 0.0  ;;  %v1076_v18 = vld [vmem:[#allocation5_spill] sm:$0xff] }
  0x3f   :  { %v250_v15 = vadd.f32 %v249_v10, %v248_v4  ;;  %v317_v62 = vsel %vm247_vm1, %v313_v21, 0.0  ;;  %v404_v1 = vsel %vm247_vm1, %v400_v52, 0.0  ;;  %v254_v2 = vsel %vm253_vm3, %v246_v32, 0.0 }
  0x40   :  { %v318_v26 = vadd.f32 %v317_v62, %v316_v40  ;;  %v274_v28 = vsel %vm253_vm3, %v268_v60, 0.0  ;;  %v338_v44 = vadd.f32 %v337_v35, %v336_v61  ;;  %v364_v29 = vadd.f32 %v362_v55, %v889_v19  ;;  %v1077_v40 = vld [vmem:[#allocation6_spill] sm:$0xff] }
  0x41   :  { %v252_v36 = vadd.f32 %v251_v11, %v250_v15  ;;  %v405_v30 = vadd.f32 %v404_v1, %v403_v16  ;;  %v383_v46 = vsel %vm247_vm1, %v379_v25, 0.0  ;;  %v384_v47 = vsel %vm247_vm1, %v380_v34, 0.0 }
  0x42   :  { %v320_v23 = vadd.f32 %v318_v26, %v251_v11  ;;  %v406_v50 = vsel %vm247_vm1, %v922_v56, 0.0  ;;  %v275_v14 = vadd.f32 %v274_v28, %v273_v22  ;;  %v340_v7 = vadd.f32 %v338_v44, %v272_v9 }
  0x43   :  { %v255_v48 = vadd.f32 %v254_v2, %v252_v36  ;;  %v385_v8 = vadd.f32 %v384_v47, %v383_v46  ;;  %v366_v60 = vadd.f32 %v364_v29, %v894_v31  ;;  %v407_v61 = vadd.f32 %v406_v50, %v405_v30 }
  0x44   :  { %v322_v5 = vadd.f32 %v320_v23, %v254_v2  ;;  %v386_v19 = vsel %vm247_vm1, %v229_v43, 0.0  ;;  %v464_v13 = vmul.f32 %v709_v27, %v876_v6  ;;  %v408_v33 = vsel %vm253_vm3, %v967_v38, 0.0 }
  0x45   :  { %256 = vadd.xlane.f32.xlu0 %v255_v48  ;;  %v342_v58 = vadd.f32 %v340_v7, %v274_v28  ;;  %v387_v12 = vadd.f32 %v386_v19, %v385_v8  ;;  %v409_v56 = vadd.f32 %v408_v33, %v407_v61  ;;  %v388_v37 = vsel %vm253_vm3, %v230_v53, 0.0 }
  0x46   :  { %323 = vadd.xlane.f32.xlu1 %v322_v5  ;;  %v471_v9 = vsel %vm183_vm0, %v464_v13, -inf  ;;  %v446_v38 = vsel %vm183_vm0, %v829_v49, -inf  ;;  %v423_v52 = vmul.f32 0.0, %v857_v59  ;;  %v424_v20 = vmul.f32 %v865_v63, %v977_v3 }
  0x47   :  { %v389_v31 = vadd.f32 %v388_v37, %v387_v12  ;;  %v475_v57 = vsel %vm247_vm1, %v471_v9, -inf  ;;  %v450_v41 = vsel %vm247_vm1, %v446_v38, -inf  ;;  %v430_v24 = vsel %vm247_vm1, %v1076_v18, 0.0 }
  0x48   :  { %v482_v35 = vrot.slane %v475_v57, 4  ;;  %v457_v53 = vrot.slane %v450_v41, 4  ;;  %v488_v49 = vsel %vm183_vm0, %v900_v39, 0.0  ;;  %v427_v21 = vsel %vm247_vm1, %v423_v52, 0.0 }
  0x49   :  { %276 = vadd.xlane.f32.xlu0 %v275_v14  ;;  %v428_v25 = vsel %vm247_vm1, %v424_v20, 0.0  ;;  %v492_v34 = vsel %vm247_vm1, %v488_v49, -inf  ;;  %v735_v59 = vmov -inf   ;;  %v432_v15 = vsel %vm253_vm3, %v1077_v40, 0.0 }
  0x4a   :  { %367 = vadd.xlane.f32.xlu1 %v366_v60  ;;  %v483_v6 = vmax.f32 %v475_v57, %v482_v35  ;;  %v458_v51 = vmax.f32 %v450_v41, %v457_v53  ;;  %v493_v4 = vsel %vm247_vm1, 0.0, %v735_v59  ;;  %v429_v63 = vadd.f32 %v428_v25, %v427_v21 }
  0x4b   :  { %v495_v10 = vsel %vm253_vm3, 0.0, %v735_v59  ;;  %v496_v11 = vmax.f32 %v492_v34, %v493_v4 }
  0x4c   :  { %v484_v17 = vrot.slane %v483_v6, 2  ;;  %v459_v32 = vrot.slane %v458_v51, 2  ;;  %v497_v45 = vmax.f32 %v493_v4, %v495_v10  ;;  %v431_v39 = vadd.f32 %v430_v24, %v429_v63 }
  0x4d   :  { %343 = vadd.xlane.f32.xlu0 %v342_v58 }
  0x4e   :  { %410 = vadd.xlane.f32.xlu1 %v409_v56  ;;  %v485_v42 = vmax.f32 %v483_v6, %v484_v17  ;;  %v460_v3 = vmax.f32 %v458_v51, %v459_v32  ;;  %v498_v16 = vmax.f32 %v496_v11, %v497_v45  ;;  %v433_v1 = vadd.f32 %v432_v15, %v431_v39 }
  0x50   :  { %v486_v43 = vrot.slane %v485_v42, 1  ;;  %v461_v62 = vrot.slane %v460_v3, 1  ;;  %v499_v2 = vrot.slane %v498_v16, 4 }
  0x51   :  { %390 = vadd.xlane.f32.xlu0 %v389_v31 }
  0x52   :  { %v487_v55 = vmax.f32 %v485_v42, %v486_v43  ;;  %v462_v27 = vmax.f32 %v460_v3, %v461_v62  ;;  %v500_v22 = vmax.f32 %v498_v16, %v499_v2 }
  0x54   :  { %v513_v54 = vsub.f32 1.0, %v487_v55  ;;  %710 = vlog2.f32 %v487_v55  ;;  %vm505_vm0 = vcmp.eq.f32.partialorder %v462_v27, 2.0  ;;  %v501_v44 = vrot.slane %v500_v22, 2 }
  0x55   :  { %434 = vadd.xlane.f32.xlu0 %v433_v1  ;;  %v634_v26 = vsel %vm505_vm0, 1.0, %v1075_v0 }
  0x56   :  { %712 = vlog2.f32 %v513_v54  ;;  %v508_v28 = vsub.f32 0.0, %v634_v26  ;;  %v512_v23 = vsub.f32 1.0, %v634_v26  ;;  %v502_v46 = vmax.f32 %v500_v22, %v501_v44 }
  0x58   :  { %v503_v50 = vrot.slane %v502_v46, 1 }
  0x5a   :  { %v504_v14 = vmax.f32 %v502_v46, %v503_v50 }
  0x5c   :  { %v535_v8 = vsel %vm253_vm3, %v504_v14, 0.0 }
  0x5d   :  { %536 = vadd.xlane.f32.xlu0 %v535_v8 }
  0x5e   :  { %v711_v36 = vpop.eup %710 }
  0x5f   :  { %v510_v29 = vmul.f32 0.6931472, %v711_v36 }
  0x60   :  { %v713_v30 = vpop.eup %712 }
  0x61   :  { %v511_v47 = vmul.f32 %v510_v29, %v508_v28  ;;  %v515_v48 = vmul.f32 0.6931472, %v713_v30 }
  0x63   :  { %v516_v5 = vmul.f32 %v515_v48, %v512_v23 }
  0x65   :  { %v517_v7 = vsub.f32 %v511_v47, %v516_v5 }
  0x67   :  { %vm518_vm1 = vcmp.ne.f32.partialorder %v517_v7, %v517_v7 }
  0x68   :  { %v519_v60 = vsel %vm518_vm1, 0.0, %v517_v7 }
  0x69   :  { %vm520_vm13 = vcmp.eq.f32.partialorder %v519_v60, inf }
  0x6a   :  { %v521_v0 = vsel %vm520_vm13, 0.0, %v519_v60 }
  0x6b   :  { %vm522_vm14 = vcmp.eq.f32.partialorder %v521_v0, -inf }
  0x6c   :  { %v523_v61 = vsel %vm522_vm14, 0.0, %v521_v0 }
  0x6d   :  { %v524_v19 = vmul.f32 %v523_v61, %v504_v14 }
  0x6f   :  { %v525_v13 = vsel %vm253_vm3, %v524_v19, 0.0 }
  0x70   :  { %526 = vadd.xlane.f32.xlu1 %v525_v13 }
  0xa9   :  { %v301_v43 = vpop.xlane.xlu1 %300 }
  0xaa   :  { %v302_v51 = vrot.slane %v301_v43, 4 }
  0xac   :  { %v303_v18 = vadd.f32 %v302_v51, %v301_v43 }
  0xae   :  { %v304_v32 = vrot.slane %v303_v18, 2 }
  0xb0   :  { %v305_v34 = vadd.f32 %v304_v32, %v303_v18 }
  0xb2   :  { %v306_v63 = vrot.slane %v305_v34, 1 }
  0xb4   :  { %v307_v40 = vadd.f32 %v306_v63, %v305_v34 }
  0xd2   :  { %v257_v33 = vpop.xlane.xlu0 %256 }
  0xd3   :  { %v258_v58 = vrot.slane %v257_v33, 4  ;;  %v324_v53 = vpop.xlane.xlu1 %323 }
  0xd4   :  { %v325_v52 = vrot.slane %v324_v53, 4 }
  0xd5   :  { %v259_v12 = vadd.f32 %v258_v58, %v257_v33 }
  0xd6   :  { %v277_v56 = vpop.xlane.xlu0 %276  ;;  %v326_v24 = vadd.f32 %v325_v52, %v324_v53 }
  0xd7   :  { %v260_v37 = vrot.slane %v259_v12, 2  ;;  %v278_v9 = vrot.slane %v277_v56, 4  ;;  %v368_v39 = vpop.xlane.xlu1 %367 }
  0xd8   :  { %v327_v49 = vrot.slane %v326_v24, 2  ;;  %v369_v1 = vrot.slane %v368_v39, 4 }
  0xd9   :  { %v279_v31 = vadd.f32 %v278_v9, %v277_v56  ;;  %v261_v57 = vadd.f32 %v260_v37, %v259_v12 }
  0xda   :  { %v344_v55 = vpop.xlane.xlu0 %343  ;;  %v328_v59 = vadd.f32 %v327_v49, %v326_v24  ;;  %v370_v22 = vadd.f32 %v369_v1, %v368_v39 }
  0xdb   :  { %v280_v35 = vrot.slane %v279_v31, 2  ;;  %v262_v6 = vrot.slane %v261_v57, 1  ;;  %v345_v20 = vrot.slane %v344_v55, 4  ;;  %v411_v16 = vpop.xlane.xlu1 %410 }
  0xdc   :  { %v329_v3 = vrot.slane %v328_v59, 1  ;;  %v412_v2 = vrot.slane %v411_v16, 4  ;;  %v371_v28 = vrot.slane %v370_v22, 2 }
  0xdd   :  { %v263_v38 = vadd.f32 %v262_v6, %v261_v57  ;;  %v281_v17 = vadd.f32 %v280_v35, %v279_v31  ;;  %v346_v54 = vadd.f32 %v345_v20, %v344_v55 }
  0xde   :  { %v330_v15 = vadd.f32 %v329_v3, %v328_v59  ;;  %v391_v62 = vpop.xlane.xlu0 %390  ;;  %v413_v36 = vadd.f32 %v412_v2, %v411_v16  ;;  %v372_v30 = vadd.f32 %v371_v28, %v370_v22 }
  0xdf   :  { %635 = vpush %v263_v38  ;;  %v282_v41 = vrot.slane %v281_v17, 1  ;;  %v347_v25 = vrot.slane %v346_v54, 2  ;;  %v392_v27 = vrot.slane %v391_v62, 4 }
  0xe0   :  { %v414_v23 = vrot.slane %v413_v36, 2  ;;  %v373_v48 = vrot.slane %v372_v30, 1 }
  0xe1   :  { %v283_v42 = vadd.f32 %v282_v41, %v281_v17  ;;  %v348_v4 = vadd.f32 %v347_v25, %v346_v54  ;;  %v393_v26 = vadd.f32 %v392_v27, %v391_v62 }
  0xe2   :  { %v415_v47 = vadd.f32 %v414_v23, %v413_v36  ;;  %v374_v7 = vadd.f32 %v373_v48, %v372_v30  ;;  %v435_v0 = vpop.xlane.xlu0 %434 }
  0xe3   :  { %637 = vpush %v283_v42  ;;  %v349_v10 = vrot.slane %v348_v4, 1  ;;  %v394_v44 = vrot.slane %v393_v26, 2  ;;  %v436_v13 = vrot.slane %v435_v0, 4 }
  0xe4   :  { %v416_v5 = vrot.slane %v415_v47, 1 }
  0xe5   :  { %v350_v45 = vadd.f32 %v349_v10, %v348_v4  ;;  %v395_v46 = vadd.f32 %v394_v44, %v393_v26  ;;  %v437_v12 = vadd.f32 %v436_v13, %v435_v0 }
  0xe6   :  { %v417_v60 = vadd.f32 %v416_v5, %v415_v47 }
  0xe7   :  { %v396_v50 = vrot.slane %v395_v46, 1  ;;  %v438_v9 = vrot.slane %v437_v12, 2 }
  0xe9   :  { %v397_v8 = vadd.f32 %v396_v50, %v395_v46  ;;  %v439_v6 = vadd.f32 %v438_v9, %v437_v12 }
  0xea   :  { %v537_v19 = vpop.xlane.xlu0 %536 }
  0xeb   :  { %v538_v58 = vrot.slane %v537_v19, 4  ;;  %v440_v41 = vrot.slane %v439_v6, 1 }
  0xed   :  { %v539_v37 = vadd.f32 %v538_v58, %v537_v19  ;;  %v441_v55 = vadd.f32 %v440_v41, %v439_v6 }
  0xef   :  { %v540_v35 = vrot.slane %v539_v37, 2 }
  0xf1   :  { %v541_v17 = vadd.f32 %v540_v35, %v539_v37 }
  0xf3   :  { %v542_v43 = vrot.slane %v541_v17, 1 }
  0xf5   :  { %v543_v52 = vadd.f32 %v542_v43, %v541_v17 }
  0xfd   :  { %v527_v61 = vpop.xlane.xlu1 %526 }
  0xfe   :  { %v528_v33 = vrot.slane %v527_v61, 4 }
 0x100   :  { %v529_v56 = vadd.f32 %v528_v33, %v527_v61 }
 0x102   :  { %v530_v31 = vrot.slane %v529_v56, 2 }
 0x104   :  { %v531_v38 = vadd.f32 %v530_v31, %v529_v56 }
 0x106   :  { %v532_v42 = vrot.slane %v531_v38, 1 }
 0x108   :  { %v533_v51 = vadd.f32 %v532_v42, %v531_v38 }
 0x110   :  { %s1045_s1 = spop %635 }
 0x114   :  { %s638_s12 = spop %637 }
 0x115   :  { %v285_v21 = vstv %s638_s12 }
 0x116   :  { %714 = vrcp.f32 %v285_v21 }
 0x120   :  { %v715_v11 = vpop.eup %714 }
 0x121   :  { %639 = vpush %v715_v11 }
 0x122   :  { %641 = vpush %v307_v40 }
 0x123   :  { %643 = vpush %v330_v15 }
 0x124   :  { %645 = vpush %v350_v45 }
 0x152   :  { %s640_s13 = spop %639 }
 0x153   :  { %s288_s14 = smul.f32 %s640_s13, %s1045_s1  ;;  %s642_s15 = spop %641 }
 0x154   :  { %s311_s16 = smul.f32 0.1, %s642_s15  ;;  %s1048_s17 = spop %643 }
 0x155   :  { %p549_p0 = scmp.ne.f32.partialorder %s288_s14, %s288_s14  ;;  %588 = sst [smem:[#allocation2 + $0x7]] %s288_s14 }
 0x156   :  { %582 = sst [smem:[#allocation2 + $0x4]] %s311_s16  ;;  %s646_s18 = spop %645 }
 0x157   :  { %s1079_s14 = smov (%p549_p0, %s288_s14), 0.0  ;;  %v352_v29 = vstv %s646_s18  ;;  %p728_p0 = pnand %p726_p13, %p723_p12 }
 0x158   :  { %716 = vrcp.f32 %v352_v29  ;;  %p551_p1 = scmp.eq.f32.partialorder %s1079_s14, inf }
 0x15a   :  { %s1081_s14 = smov (%p551_p1, %s1079_s14), 3.4028235e+38 }
 0x15b   :  { %p553_p2 = scmp.eq.f32.partialorder %s1081_s14, -inf }
 0x15d   :  { %s1083_s14 = smov (%p553_p2, %s1081_s14), -3.4028235e+38 }
 0x15e   :  { %556 = sst [smem:[#allocation2]] %s1083_s14 }
 0x162   :  { %v717_v14 = vpop.eup %716 }
 0x163   :  { %647 = vpush %v717_v14 }
 0x164   :  { %649 = vpush %v374_v7 }
 0x165   :  { %651 = vpush %v397_v8 }
 0x166   :  { %653 = vpush %v417_v60 }
 0x194   :  { %s648_s19 = spop %647 }
 0x195   :  { %s355_s20 = smul.f32 %s648_s19, %s1048_s17  ;;  %s650_s21 = spop %649 }
 0x196   :  { %s378_s22 = smul.f32 0.05, %s650_s21  ;;  %s1051_s23 = spop %651 }
 0x197   :  { %p557_p3 = scmp.ne.f32.partialorder %s355_s20, %s355_s20  ;;  %590 = sst [smem:[#allocation2 + $0x8]] %s355_s20 }
 0x198   :  { %584 = sst [smem:[#allocation2 + $0x5]] %s378_s22  ;;  %s654_s24 = spop %653 }
 0x199   :  { %s1085_s20 = smov (%p557_p3, %s355_s20), 0.0  ;;  %v419_v57 = vstv %s654_s24 }
 0x19a   :  { %718 = vrcp.f32 %v419_v57  ;;  %p559_p4 = scmp.eq.f32.partialorder %s1085_s20, inf }
 0x19c   :  { %s1087_s20 = smov (%p559_p4, %s1085_s20), 3.4028235e+38 }
 0x19d   :  { %p561_p5 = scmp.eq.f32.partialorder %s1087_s20, -inf }
 0x19f   :  { %s1089_s20 = smov (%p561_p5, %s1087_s20), -3.4028235e+38 }
 0x1a0   :  { %564 = sst [smem:[#allocation2 + $0x1]] %s1089_s20 }
 0x1a4   :  { %v719_v53 = vpop.eup %718 }
 0x1a5   :  { %655 = vpush %v719_v53 }
 0x1a6   :  { %657 = vpush %v441_v55 }
 0x1a7   :  { %659 = vpush %v533_v51 }
 0x1a8   :  { %661 = vpush %v543_v52 }
 0x1d6   :  { %s656_s25 = spop %655 }
 0x1d7   :  { %s422_s26 = smul.f32 %s656_s25, %s1051_s23  ;;  %s658_s27 = spop %657 }
 0x1d8   :  { %s445_s28 = smul.f32 0.05, %s658_s27  ;;  %s660_s29 = spop %659 }
 0x1d9   :  { %p565_p6 = scmp.ne.f32.partialorder %s422_s26, %s422_s26  ;;  %592 = sst [smem:[#allocation2 + $0x9]] %s422_s26 }
 0x1da   :  { %586 = sst [smem:[#allocation2 + $0x6]] %s445_s28  ;;  %s662_s30 = spop %661 }
 0x1db   :  { %s1091_s26 = smov (%p565_p6, %s422_s26), 0.0  ;;  %v545_v20 = vstv %s662_s30 }
 0x1dc   :  { %720 = vrcp.f32 %v545_v20  ;;  %p567_p7 = scmp.eq.f32.partialorder %s1091_s26, inf }
 0x1de   :  { %s1093_s26 = smov (%p567_p7, %s1091_s26), 3.4028235e+38 }
 0x1df   :  { %p569_p8 = scmp.eq.f32.partialorder %s1093_s26, -inf }
 0x1e1   :  { %s1095_s26 = smov (%p569_p8, %s1093_s26), -3.4028235e+38 }
 0x1e2   :  { %572 = sst [smem:[#allocation2 + $0x2]] %s1095_s26 }
 0x1e6   :  { %v721_v18 = vpop.eup %720 }
 0x1e7   :  { %663 = vpush %v721_v18 }
 0x218   :  { %s664_s3 = spop %663 }
 0x219   :  { %s548_s4 = smul.f32 %s664_s3, %s660_s29 }
 0x21b   :  { %p573_p9 = scmp.ne.f32.partialorder %s548_s4, %s548_s4 }
 0x21d   :  { %s1097_s4 = smov (%p573_p9, %s548_s4), 0.0 }
 0x21e   :  { %p575_p10 = scmp.eq.f32.partialorder %s1097_s4, inf }
 0x220   :  { %s1099_s4 = smov (%p575_p10, %s1097_s4), 3.4028235e+38 }
 0x221   :  { %p577_p11 = scmp.eq.f32.partialorder %s1099_s4, -inf }
 0x223   :  { %s1101_s4 = smov (%p577_p11, %s1099_s4), -3.4028235e+38 }
 0x224   :  { %580 = sst [smem:[#allocation2 + $0x3]] %s1101_s4 }
 0x225   :  { %731 = shalt.err (!%p728_p0)
}
 0x226   :  { %s736_s11 = smov [#allocation2]  }
 0x227   :  { %600 = dma.smem_to_hbm %s736_s11, 16, %s1068_s2, [#allocation3]  }
 0x228   :  { %732 = dma.done.wait [#allocation3], 16  }
 0x229   :  { %733 = vsyncadd [#allocation3], 4294967280 }
 0x22a   :  { %604 = sfence }
 0x22b   :  { %605 = vsyncpa [#allocation3], 1 }

</bundles_post_ra>
